<compile_context>
chip_gen: v7x
topology: tpu7x:2x2x1
jax: 0.10.0
libtpu: 0.0.40
codegen_flags: <defaults>
</compile_context>

<pallas_src>
import math

import jax
import jax.numpy as jnp
from jax.experimental import pallas as pl
from jax.experimental.pallas import tpu as pltpu


def _logreg_kernel(x_ref, w_ref, b_ref, o_ref):
    # x_ref: (R, D*L)   -- each row packs L consecutive batch samples' features.
    # w_ref: (D*L, L)   -- staircase weights: w_ref[g*D + d, g] = w[d], else 0.
    # b_ref: (1,) SMEM  -- scalar bias.
    # o_ref: (R, L)     -- logit of batch sample (row*L + g) lands at [row, g].
    z = jnp.dot(x_ref[...], w_ref[...], preferred_element_type=jnp.float32)
    z = z + b_ref[0]
    o_ref[...] = jax.nn.sigmoid(z).astype(o_ref.dtype)


def _round_up(n, m):
    return ((n + m - 1) // m) * m


_TARGET_TILE_BYTES = 1 << 20   # ~1 MiB of x per grid step (amortizes ~0.35us/step)
_MAX_WEIGHT_BYTES = 4 << 20    # keep the resident staircase weight small in VMEM


@jax.jit
def logistic_regression(x, weight, bias):
    """x: (B, D); weight: (1, D) (PyTorch nn.Linear layout); bias: (1,)."""
    B, D = x.shape
    dtype = x.dtype
    itemsize = dtype.itemsize

    # Lane-group size L: pack L batch samples per view row so the row length
    # D*L is a multiple of 128 (dense vregs / dense DMA).  Target L ~= 32, but
    # shrink it if the staircase weight (D*L*L elements) would get large.
    L0 = 128 // math.gcd(D, 128)
    k = max(1, 32 // L0)
    while k > 1 and D * (L0 * k) * (L0 * k) * itemsize > _MAX_WEIGHT_BYTES:
        k -= 1
    L = L0 * k

    # Rows of the (B/L, D*L) view per grid step: ~1 MiB of x, multiple of 8.
    row_bytes = D * L * itemsize
    R = max(8, min(512, (_TARGET_TILE_BYTES // row_bytes) // 8 * 8))
    rows_needed = _round_up(pl.cdiv(B, L), 8)
    R = min(R, rows_needed)

    samples_per_tile = R * L
    B_pad = _round_up(B, samples_per_tile)
    num_tiles = B_pad // samples_per_tile

    if B_pad != B:
        # Zero rows -> sigmoid(bias); sliced off below.
        x = jnp.pad(x, ((0, B_pad - B), (0, 0)))
    x_view = x.reshape(B_pad // L, D * L)  # free, row-major view

    # Staircase weight: column g carries w along rows g*D .. g*D + D - 1.
    w_flat = weight.reshape(D).astype(dtype)
    w_stair = (jnp.eye(L, dtype=dtype)[:, None, :] * w_flat[None, :, None])
    w_stair = w_stair.reshape(L * D, L)

    b_smem = bias.reshape(1).astype(jnp.float32)

    out = pl.pallas_call(
        _logreg_kernel,
        out_shape=jax.ShapeDtypeStruct((num_tiles * R, L), dtype),
        grid_spec=pltpu.PrefetchScalarGridSpec(
            num_scalar_prefetch=0,
            grid=(num_tiles,),
            in_specs=[
                pl.BlockSpec((R, D * L), lambda i: (i, 0)),          # x: pipelined
                pl.BlockSpec((L * D, L), lambda i: (0, 0)),          # weight: resident
                pl.BlockSpec(memory_space=pltpu.MemorySpace.SMEM),   # bias: scalar
            ],
            out_specs=pl.BlockSpec((R, L), lambda i: (i, 0)),
        ),
        compiler_params=pltpu.CompilerParams(
            dimension_semantics=("parallel",),
        ),
    )(x_view, w_stair, b_smem)

    # (num_tiles*R, L) row-major is exactly padded-batch order; undo the packing.
    return out.reshape(B_pad, 1)[:B]


if __name__ == "__main__":
    key = jax.random.PRNGKey(0)
    kx, kw, kb = jax.random.split(key, 3)

    B, D = 8, 32  # batch=8, input_dim=32
    x = jax.random.normal(kx, (B, D), dtype=jnp.float32)

    # Deterministic parameter init mirroring nn.Linear(input_dim, 1) shapes:
    # weight (1, D), bias (1,), uniform(-1/sqrt(D), 1/sqrt(D)).
    bound = 1.0 / (D ** 0.5)
    weight = jax.random.uniform(kw, (1, D), minval=-bound, maxval=bound, dtype=jnp.float32)
    bias = jax.random.uniform(kb, (1,), minval=-bound, maxval=bound, dtype=jnp.float32)

    y = logistic_regression(x, weight, bias)
    jax.block_until_ready(y)

    # Reference check in plain JAX.
    y_ref = jax.nn.sigmoid(x @ weight.T + bias)
    assert y.shape == (B, 1)
    assert jnp.allclose(y, y_ref, atol=1e-5, rtol=1e-5)

    print("KERNEL_OK")
</pallas_src>

<mosaic_0001>
module attributes {stable_mosaic.version = 11 : i64} {
  func.func @_logreg_kernel(%arg0: i32, %arg1: memref<8x1024xf32, #tpu.memory_space<vmem>>, %arg2: memref<1024x32xf32, #tpu.memory_space<vmem>>, %arg3: memref<1xf32, #tpu.memory_space<smem>>, %arg4: memref<8x32xf32, #tpu.memory_space<vmem>>) attributes {dimension_semantics = [#tpu.dimension_semantics<parallel>], iteration_bounds = array<i64: 1>, scalar_prefetch = 0 : i64, scratch_operands = 0 : i64, tpu.core_type = #tpu.core_type<tc>, window_params = [{transform_indices = @transform_0, window_bounds = array<i64: 8, 1024>}, {pipeline_mode = #tpu.pipeline_mode<synchronous>, transform_indices = @transform_1, window_bounds = array<i64: 1024, 32>}, {transform_indices = @transform_2, window_bounds = array<i64: 1>}, {transform_indices = @transform_3, window_bounds = array<i64: 8, 32>}]} {
    %c0 = arith.constant 0 : index
    %c0_0 = arith.constant 0 : index
    %0 = vector.load %arg1[%c0, %c0_0] : memref<8x1024xf32, #tpu.memory_space<vmem>>, vector<8x1024xf32>
    %c0_1 = arith.constant 0 : index
    %c0_2 = arith.constant 0 : index
    %1 = vector.load %arg2[%c0_1, %c0_2] : memref<1024x32xf32, #tpu.memory_space<vmem>>, vector<1024x32xf32>
    %cst = arith.constant dense<0.000000e+00> : vector<8x32xf32>
    %2 = tpu.matmul %0, %1, %cst {dimension_numbers = #tpu.dot_dimension_numbers<[1], [0], [0], [1], [0, 0, 1, 1], [], []>} : vector<8x1024xf32>, vector<1024x32xf32>, vector<8x32xf32> -> vector<8x32xf32>
    %c0_3 = arith.constant 0 : index
    %3 = memref.load %arg3[%c0_3] : memref<1xf32, #tpu.memory_space<smem>>
    %4 = vector.broadcast %3 : f32 to vector<8x32xf32>
    %5 = arith.addf %2, %4 : vector<8x32xf32>
    %6 = arith.negf %5 : vector<8x32xf32>
    %7 = math.exp %6 : vector<8x32xf32>
    %cst_4 = arith.constant 1.000000e+00 : f32
    %8 = vector.broadcast %cst_4 : f32 to vector<8x32xf32>
    %9 = arith.addf %8, %7 : vector<8x32xf32>
    %10 = arith.divf %8, %9 : vector<8x32xf32>
    %c0_5 = arith.constant 0 : index
    %c0_6 = arith.constant 0 : index
    %11 = vector.load %arg4[%c0_5, %c0_6] : memref<8x32xf32, #tpu.memory_space<vmem>>, vector<8x32xf32>
    tpu.vector_store %arg4[%c0_5, %c0_6], %10 {strides = array<i32>} : memref<8x32xf32, #tpu.memory_space<vmem>>, vector<8x32xf32>,
    return
  }
  func.func @transform_0(%arg0: i32) -> (i32, i32) {
    %c0_i32 = arith.constant 0 : i32
    %c0_i32_0 = arith.constant 0 : i32
    return %arg0, %c0_i32 : i32, i32
  }
  func.func @transform_1(%arg0: i32) -> (i32, i32) {
    %c0_i32 = arith.constant 0 : i32
    %c0_i32_0 = arith.constant 0 : i32
    %c0_i32_1 = arith.constant 0 : i32
    return %c0_i32, %c0_i32_0 : i32, i32
  }
  func.func @transform_2(%arg0: i32) -> i32 {
    %c0_i32 = arith.constant 0 : i32
    %c0_i32_0 = arith.constant 0 : i32
    return %c0_i32 : i32
  }
  func.func @transform_3(%arg0: i32) -> (i32, i32) {
    %c0_i32 = arith.constant 0 : i32
    %c0_i32_0 = arith.constant 0 : i32
    return %arg0, %c0_i32 : i32, i32
  }
}

</mosaic_0001>

<bundles_post_ra>
// kernel: logistic_regression.1
= control target key start
LH: loop header
LB: loop body
LE: loop exit
PB: predicated region body
PF: predicated region fallthrough
CT: control target
= control target key end

     0   :  { %vm439_vm0 = vcmask 261120   ;;  %s1152_s1 = inlined_call_operand.vmem [shape: f32[1024,32], index: 1, kind: input, shape index: {}]   ;;  %s1153_s0 = inlined_call_operand.vmem [shape: f32[8,1024], index: 0, kind: input, shape index: {}]   ;;  %s1154_s2 = inlined_call_operand.<no memory space> [shape: f32[1], index: 2, kind: input, shape index: {}]   ;;  %s1155_s3 = inlined_call_operand.vmem [shape: f32[8,32], index: 3, kind: output, shape index: {}]  }
   0x1   :  { %v39_v0 = vld [vmem:[%s1152_s1 + $0x80] sm:$0xff]  ;;  %v40_v1 = vld [vmem:[%s1152_s1 + $0x88] sm:$0xff]  ;;  %v41_v11 = vld [vmem:[%s1152_s1 + $0x90] sm:$0xff] }
   0x2   :  { %v23_v2 = vld [vmem:[%s1152_s1] sm:$0xff]  ;;  %v586_v3 = vpack.c.bf16 %v40_v1, %v39_v0  ;;  %v24_v4 = vld [vmem:[%s1152_s1 + $0x8] sm:$0xff]  ;;  %v42_v13 = vld [vmem:[%s1152_s1 + $0x98] sm:$0xff] }
   0x3   :  { %v71_v5 = vld [vmem:[%s1152_s1 + $0x180] sm:$0xff]  ;;  %v72_v6 = vld [vmem:[%s1152_s1 + $0x188] sm:$0xff]  ;;  %v588_v7 = vpack.c.bf16 %v24_v4, %v23_v2  ;;  %v25_v14 = vld [vmem:[%s1152_s1 + $0x10] sm:$0xff]  ;;  %v590_v16 = vpack.c.bf16 %v42_v13, %v41_v11 }
   0x4   :  { %v618_v8 = vpack.c.bf16 %v72_v6, %v71_v5  ;;  %v55_v9 = vld [vmem:[%s1152_s1 + $0x100] sm:$0xff]  ;;  %v56_v10 = vld [vmem:[%s1152_s1 + $0x108] sm:$0xff]  ;;  %587 = vmatprep.subr.bf16.mxu0 %v586_v3  ;;  %v26_v15 = vld [vmem:[%s1152_s1 + $0x18] sm:$0xff] }
   0x5   :  { %v620_v12 = vpack.c.bf16 %v56_v10, %v55_v9  ;;  %589 = vmatpush3.bf16.msra.mxu0 %v588_v7  ;;  %v592_v17 = vpack.c.bf16 %v26_v15, %v25_v14  ;;  %v73_v18 = vld [vmem:[%s1152_s1 + $0x190] sm:$0xff]  ;;  %v74_v19 = vld [vmem:[%s1152_s1 + $0x198] sm:$0xff]  ;;  %v43_v23 = vld [vmem:[%s1152_s1 + $0xa0] sm:$0xff] }
   0x6   :  { %619 = vmatprep.subr.bf16.mxu1 %v618_v8  ;;  %v57_v20 = vld [vmem:[%s1152_s1 + $0x110] sm:$0xff]  ;;  %v622_v21 = vpack.c.bf16 %v74_v19, %v73_v18  ;;  %v58_v22 = vld [vmem:[%s1152_s1 + $0x118] sm:$0xff]  ;;  %v44_v24 = vld [vmem:[%s1152_s1 + $0xa8] sm:$0xff]  ;;  %591 = vmatprep.subr.bf16.mxu0 %v590_v16 }
   0x7   :  { %621 = vmatpush3.bf16.msra.mxu1 %v620_v12  ;;  %v624_v25 = vpack.c.bf16 %v58_v22, %v57_v20  ;;  %v594_v26 = vpack.c.bf16 %v44_v24, %v43_v23  ;;  %v27_v27 = vld [vmem:[%s1152_s1 + $0x20] sm:$0xff]  ;;  %v28_v28 = vld [vmem:[%s1152_s1 + $0x28] sm:$0xff]  ;;  %v45_v35 = vld [vmem:[%s1152_s1 + $0xb0] sm:$0xff] }
   0x8   :  { %v75_v29 = vld [vmem:[%s1152_s1 + $0x1a0] sm:$0xff]  ;;  %623 = vmatprep.subr.bf16.mxu1 %v622_v21  ;;  %v76_v30 = vld [vmem:[%s1152_s1 + $0x1a8] sm:$0xff]  ;;  %v596_v33 = vpack.c.bf16 %v28_v28, %v27_v27  ;;  %v46_v36 = vld [vmem:[%s1152_s1 + $0xb8] sm:$0xff] }
   0x9   :  { %v59_v31 = vld [vmem:[%s1152_s1 + $0x120] sm:$0xff]  ;;  %v60_v32 = vld [vmem:[%s1152_s1 + $0x128] sm:$0xff]  ;;  %593 = vmatpush3.bf16.msra.mxu0 %v592_v17  ;;  %v626_v34 = vpack.c.bf16 %v76_v30, %v75_v29  ;;  %v29_v37 = vld [vmem:[%s1152_s1 + $0x30] sm:$0xff]  ;;  %v598_v39 = vpack.c.bf16 %v46_v36, %v45_v35 }
   0xa   :  { %595 = vmatprep.subr.bf16.mxu0 %v594_v26  ;;  %v628_v38 = vpack.c.bf16 %v60_v32, %v59_v31  ;;  %v30_v40 = vld [vmem:[%s1152_s1 + $0x38] sm:$0xff]  ;;  %v77_v41 = vld [vmem:[%s1152_s1 + $0x1b0] sm:$0xff]  ;;  %v47_v46 = vld [vmem:[%s1152_s1 + $0xc0] sm:$0xff] }
   0xb   :  { %625 = vmatpush3.bf16.msra.mxu1 %v624_v25  ;;  %v78_v42 = vld [vmem:[%s1152_s1 + $0x1b8] sm:$0xff]  ;;  %v61_v44 = vld [vmem:[%s1152_s1 + $0x130] sm:$0xff]  ;;  %v48_v47 = vld [vmem:[%s1152_s1 + $0xc8] sm:$0xff]  ;;  %v600_v48 = vpack.c.bf16 %v30_v40, %v29_v37 }
   0xc   :  { %627 = vmatprep.subr.bf16.mxu1 %v626_v34  ;;  %v630_v43 = vpack.c.bf16 %v78_v42, %v77_v41  ;;  %v62_v45 = vld [vmem:[%s1152_s1 + $0x138] sm:$0xff]  ;;  %v79_v49 = vld [vmem:[%s1152_s1 + $0x1c0] sm:$0xff]  ;;  %v80_v50 = vld [vmem:[%s1152_s1 + $0x1c8] sm:$0xff]  ;;  %v602_v52 = vpack.c.bf16 %v48_v47, %v47_v46 }
   0xd   :  { %597 = vmatpush3.bf16.msra.mxu0 %v596_v33  ;;  %v632_v51 = vpack.c.bf16 %v62_v45, %v61_v44  ;;  %v31_v53 = vld [vmem:[%s1152_s1 + $0x40] sm:$0xff]  ;;  %v32_v54 = vld [vmem:[%s1152_s1 + $0x48] sm:$0xff]  ;;  %v634_v56 = vpack.c.bf16 %v80_v50, %v79_v49  ;;  %v49_v58 = vld [vmem:[%s1152_s1 + $0xd0] sm:$0xff] }
   0xe   :  { %599 = vmatprep.subr.bf16.mxu0 %v598_v39  ;;  %v63_v55 = vld [vmem:[%s1152_s1 + $0x140] sm:$0xff]  ;;  %v64_v57 = vld [vmem:[%s1152_s1 + $0x148] sm:$0xff]  ;;  %v50_v59 = vld [vmem:[%s1152_s1 + $0xd8] sm:$0xff]  ;;  %v604_v62 = vpack.c.bf16 %v32_v54, %v31_v53 }
   0xf   :  { %629 = vmatpush3.bf16.msra.mxu1 %v628_v38  ;;  %v81_v60 = vld [vmem:[%s1152_s1 + $0x1d0] sm:$0xff]  ;;  %v82_v61 = vld [vmem:[%s1152_s1 + $0x1d8] sm:$0xff]  ;;  %v636_v63 = vpack.c.bf16 %v64_v57, %v63_v55  ;;  %v606_v0 = vpack.c.bf16 %v50_v59, %v49_v58  ;;  %v51_v6 = vld [vmem:[%s1152_s1 + $0xe0] sm:$0xff] }
  0x10   :  { %631 = vmatprep.subr.bf16.mxu1 %v630_v43  ;;  %v33_v1 = vld [vmem:[%s1152_s1 + $0x50] sm:$0xff]  ;;  %v34_v2 = vld [vmem:[%s1152_s1 + $0x58] sm:$0xff]  ;;  %v638_v4 = vpack.c.bf16 %v82_v61, %v81_v60  ;;  %v52_v7 = vld [vmem:[%s1152_s1 + $0xe8] sm:$0xff] }
  0x11   :  { %601 = vmatpush3.bf16.msra.mxu0 %v600_v48  ;;  %v65_v3 = vld [vmem:[%s1152_s1 + $0x150] sm:$0xff]  ;;  %v66_v5 = vld [vmem:[%s1152_s1 + $0x158] sm:$0xff]  ;;  %v83_v8 = vld [vmem:[%s1152_s1 + $0x1e0] sm:$0xff]  ;;  %v608_v10 = vpack.c.bf16 %v34_v2, %v33_v1  ;;  %v610_v14 = vpack.c.bf16 %v52_v7, %v51_v6 }
  0x12   :  { %603 = vmatprep.subr.bf16.mxu0 %v602_v52  ;;  %v84_v9 = vld [vmem:[%s1152_s1 + $0x1e8] sm:$0xff]  ;;  %v35_v11 = vld [vmem:[%s1152_s1 + $0x60] sm:$0xff]  ;;  %v640_v13 = vpack.c.bf16 %v66_v5, %v65_v3  ;;  %v53_v19 = vld [vmem:[%s1152_s1 + $0xf0] sm:$0xff] }
  0x13   :  { %633 = vmatpush3.bf16.msra.mxu1 %v632_v51  ;;  %v36_v12 = vld [vmem:[%s1152_s1 + $0x68] sm:$0xff]  ;;  %v67_v15 = vld [vmem:[%s1152_s1 + $0x160] sm:$0xff]  ;;  %v642_v18 = vpack.c.bf16 %v84_v9, %v83_v8  ;;  %v54_v20 = vld [vmem:[%s1152_s1 + $0xf8] sm:$0xff] }
  0x14   :  { %635 = vmatprep.subr.bf16.mxu1 %v634_v56  ;;  %v68_v16 = vld [vmem:[%s1152_s1 + $0x168] sm:$0xff]  ;;  %v18_v21 = vld [vmem:[%s1153_s0 + $0x18] sm:$0xff]  ;;  %v85_v22 = vld [vmem:[%s1152_s1 + $0x1f0] sm:$0xff]  ;;  %v612_v24 = vpack.c.bf16 %v36_v12, %v35_v11  ;;  %v614_v26 = vpack.c.bf16 %v54_v20, %v53_v19 }
  0x15   :  { %605 = vmatpush3.bf16.msra.mxu0 %v604_v62  ;;  %v16_v17 = vld [vmem:[%s1153_s0 + $0x8] sm:$0xff]  ;;  %v86_v23 = vld [vmem:[%s1152_s1 + $0x1f8] sm:$0xff]  ;;  %287 = vmatprep.mubr.f32.mxu1 %v18_v21  ;;  %v644_v25 = vpack.c.bf16 %v68_v16, %v67_v15  ;;  %v37_v27 = vld [vmem:[%s1152_s1 + $0x70] sm:$0xff] }
  0x16   :  { %607 = vmatprep.subr.bf16.mxu0 %v606_v0  ;;  %217 = vmatprep.mubr.f32.mxu0 %v16_v17  ;;  %v38_v28 = vld [vmem:[%s1152_s1 + $0x78] sm:$0xff]  ;;  %v69_v29 = vld [vmem:[%s1152_s1 + $0x170] sm:$0xff]  ;;  %v646_v30 = vpack.c.bf16 %v86_v23, %v85_v22  ;;  %v103_v32 = vld [vmem:[%s1152_s1 + $0x280] sm:$0xff] }
  0x17   :  { %637 = vmatpush3.bf16.msra.mxu1 %v636_v63  ;;  %v70_v31 = vld [vmem:[%s1152_s1 + $0x178] sm:$0xff]  ;;  %v104_v33 = vld [vmem:[%s1152_s1 + $0x288] sm:$0xff]  ;;  %v135_v34 = vld [vmem:[%s1152_s1 + $0x380] sm:$0xff]  ;;  %v616_v36 = vpack.c.bf16 %v38_v28, %v37_v27 }
  0x18   :  { %639 = vmatprep.subr.bf16.mxu1 %v638_v4  ;;  %v136_v35 = vld [vmem:[%s1152_s1 + $0x388] sm:$0xff]  ;;  %v648_v37 = vpack.c.bf16 %v70_v31, %v69_v29  ;;  %v650_v38 = vpack.c.bf16 %v104_v33, %v103_v32  ;;  %v87_v39 = vld [vmem:[%s1152_s1 + $0x200] sm:$0xff]  ;;  %v105_v44 = vld [vmem:[%s1152_s1 + $0x290] sm:$0xff] }
  0x19   :  { %609 = vmatpush3.bf16.msra.mxu0 %v608_v10  ;;  %v88_v40 = vld [vmem:[%s1152_s1 + $0x208] sm:$0xff]  ;;  %v119_v41 = vld [vmem:[%s1152_s1 + $0x300] sm:$0xff]  ;;  %v682_v42 = vpack.c.bf16 %v136_v35, %v135_v34  ;;  %v106_v45 = vld [vmem:[%s1152_s1 + $0x298] sm:$0xff] }
  0x1a   :  { %611 = vmatprep.subr.bf16.mxu0 %v610_v14  ;;  %v120_v43 = vld [vmem:[%s1152_s1 + $0x308] sm:$0xff]  ;;  %v137_v46 = vld [vmem:[%s1152_s1 + $0x390] sm:$0xff]  ;;  %v138_v47 = vld [vmem:[%s1152_s1 + $0x398] sm:$0xff]  ;;  %v652_v49 = vpack.c.bf16 %v88_v40, %v87_v39  ;;  %v654_v52 = vpack.c.bf16 %v106_v45, %v105_v44 }
  0x1b   :  { %641 = vmatpush3.bf16.msra.mxu1 %v640_v13  ;;  %v15_v48 = vld [vmem:[%s1153_s0] sm:$0xff]  ;;  %v17_v50 = vld [vmem:[%s1153_s0 + $0x10] sm:$0xff]  ;;  %v684_v51 = vpack.c.bf16 %v120_v43, %v119_v41  ;;  %v90_v54 = vld [vmem:[%s1152_s1 + $0x218] sm:$0xff]  ;;  %v686_v56 = vpack.c.bf16 %v138_v47, %v137_v46 }
  0x1c   :  { %643 = vmatprep.subr.bf16.mxu1 %v642_v18  ;;  %v89_v53 = vld [vmem:[%s1152_s1 + $0x210] sm:$0xff]  ;;  %v122_v57 = vld [vmem:[%s1152_s1 + $0x318] sm:$0xff]  ;;  %v107_v58 = vld [vmem:[%s1152_s1 + $0x2a0] sm:$0xff] }
  0x1d   :  { %613 = vmatpush3.bf16.msra.mxu0 %v612_v24  ;;  %v121_v55 = vld [vmem:[%s1152_s1 + $0x310] sm:$0xff]  ;;  %v108_v59 = vld [vmem:[%s1152_s1 + $0x2a8] sm:$0xff]  ;;  %v139_v60 = vld [vmem:[%s1152_s1 + $0x3a0] sm:$0xff]  ;;  %v656_v62 = vpack.c.bf16 %v90_v54, %v89_v53 }
  0x1e   :  { %615 = vmatprep.subr.bf16.mxu0 %v614_v26  ;;  %v140_v61 = vld [vmem:[%s1152_s1 + $0x3a8] sm:$0xff]  ;;  %v688_v63 = vpack.c.bf16 %v122_v57, %v121_v55  ;;  %v658_v0 = vpack.c.bf16 %v108_v59, %v107_v58  ;;  %v91_v1 = vld [vmem:[%s1152_s1 + $0x220] sm:$0xff]  ;;  %v109_v6 = vld [vmem:[%s1152_s1 + $0x2b0] sm:$0xff] }
  0x1f   :  { %645 = vmatpush3.bf16.msra.mxu1 %v644_v25  ;;  %v92_v2 = vld [vmem:[%s1152_s1 + $0x228] sm:$0xff]  ;;  %v123_v3 = vld [vmem:[%s1152_s1 + $0x320] sm:$0xff]  ;;  %v690_v4 = vpack.c.bf16 %v140_v61, %v139_v60  ;;  %v110_v7 = vld [vmem:[%s1152_s1 + $0x2b8] sm:$0xff] }
  0x20   :  { %647 = vmatprep.subr.bf16.mxu1 %v646_v30  ;;  %v124_v5 = vld [vmem:[%s1152_s1 + $0x328] sm:$0xff]  ;;  %v141_v8 = vld [vmem:[%s1152_s1 + $0x3b0] sm:$0xff]  ;;  %v142_v9 = vld [vmem:[%s1152_s1 + $0x3b8] sm:$0xff]  ;;  %v660_v10 = vpack.c.bf16 %v92_v2, %v91_v1  ;;  %v662_v12 = vpack.c.bf16 %v110_v7, %v109_v6 }
  0x21   :  { %617 = vmatpush3.bf16.msra.mxu0 %v616_v36  ;;  %v692_v11 = vpack.c.bf16 %v124_v5, %v123_v3  ;;  %v93_v13 = vld [vmem:[%s1152_s1 + $0x230] sm:$0xff]  ;;  %v94_v14 = vld [vmem:[%s1152_s1 + $0x238] sm:$0xff]  ;;  %v694_v16 = vpack.c.bf16 %v142_v9, %v141_v8  ;;  %v111_v18 = vld [vmem:[%s1152_s1 + $0x2c0] sm:$0xff]  ;;  %v152_v9 = vstv %s1154_s2 }
  0x22   :  { %651 = vmatprep.subr.bf16.mxu0 %v650_v38  ;;  %v125_v15 = vld [vmem:[%s1152_s1 + $0x330] sm:$0xff]  ;;  %v126_v17 = vld [vmem:[%s1152_s1 + $0x338] sm:$0xff]  ;;  %v112_v19 = vld [vmem:[%s1152_s1 + $0x2c8] sm:$0xff]  ;;  %v664_v22 = vpack.c.bf16 %v94_v14, %v93_v13 }
  0x23   :  { %649 = vmatpush3.bf16.msra.mxu1 %v648_v37  ;;  %v143_v20 = vld [vmem:[%s1152_s1 + $0x3c0] sm:$0xff]  ;;  %v144_v21 = vld [vmem:[%s1152_s1 + $0x3c8] sm:$0xff]  ;;  %v22_v24 = vld [vmem:[%s1153_s0 + $0x38] sm:$0xff]  ;;  %v696_v25 = vpack.c.bf16 %v126_v17, %v125_v15  ;;  %v666_v26 = vpack.c.bf16 %v112_v19, %v111_v18 }
  0x24   :  { %683 = vmatprep.subr.bf16.mxu1 %v682_v42  ;;  %218 = vmatmul.mubr.f32.vlgmr.msra.gmra.mrb[0].mxu0 %v15_v48  ;;  %v20_v23 = vld [vmem:[%s1153_s0 + $0x28] sm:$0xff]  ;;  %v95_v27 = vld [vmem:[%s1152_s1 + $0x240] sm:$0xff]  ;;  %v698_v30 = vpack.c.bf16 %v144_v21, %v143_v20  ;;  %v113_v32 = vld [vmem:[%s1152_s1 + $0x2d0] sm:$0xff] }
  0x25   :  { %653 = vmatpush3.bf16.msra.mxu0 %v652_v49  ;;  %v96_v28 = vld [vmem:[%s1152_s1 + $0x248] sm:$0xff]  ;;  %v127_v29 = vld [vmem:[%s1152_s1 + $0x340] sm:$0xff]  ;;  %v114_v33 = vld [vmem:[%s1152_s1 + $0x2d8] sm:$0xff]  ;;  %357 = vmatprep.mubr.f32.mxu0 %v20_v23 }
  0x26   :  { %288 = vmatmul.mubr.f32.vlgmr.msra.gmra.mrb[0].mxu1 %v17_v50  ;;  %655 = vmatprep.subr.bf16.mxu0 %v654_v52  ;;  %v128_v31 = vld [vmem:[%s1152_s1 + $0x348] sm:$0xff]  ;;  %v145_v34 = vld [vmem:[%s1152_s1 + $0x3d0] sm:$0xff]  ;;  %v146_v35 = vld [vmem:[%s1152_s1 + $0x3d8] sm:$0xff]  ;;  %v668_v36 = vpack.c.bf16 %v96_v28, %v95_v27  ;;  %v670_v38 = vpack.c.bf16 %v114_v33, %v113_v32 }
  0x27   :  { %685 = vmatpush3.bf16.msra.mxu1 %v684_v51  ;;  %427 = vmatprep.mubr.f32.mxu1 %v22_v24  ;;  %v700_v37 = vpack.c.bf16 %v128_v31, %v127_v29  ;;  %v97_v39 = vld [vmem:[%s1152_s1 + $0x250] sm:$0xff]  ;;  %v98_v40 = vld [vmem:[%s1152_s1 + $0x258] sm:$0xff]  ;;  %v702_v42 = vpack.c.bf16 %v146_v35, %v145_v34  ;;  %v115_v44 = vld [vmem:[%s1152_s1 + $0x2e0] sm:$0xff] }
  0x28   :  { %687 = vmatprep.subr.bf16.mxu1 %v686_v56  ;;  %v129_v41 = vld [vmem:[%s1152_s1 + $0x350] sm:$0xff]  ;;  %v130_v43 = vld [vmem:[%s1152_s1 + $0x358] sm:$0xff]  ;;  %v116_v45 = vld [vmem:[%s1152_s1 + $0x2e8] sm:$0xff]  ;;  %v672_v48 = vpack.c.bf16 %v98_v40, %v97_v39 }
  0x29   :  { %657 = vmatpush3.bf16.msra.mxu0 %v656_v62  ;;  %v147_v46 = vld [vmem:[%s1152_s1 + $0x3e0] sm:$0xff]  ;;  %v148_v47 = vld [vmem:[%s1152_s1 + $0x3e8] sm:$0xff]  ;;  %v704_v49 = vpack.c.bf16 %v130_v43, %v129_v41  ;;  %v674_v50 = vpack.c.bf16 %v116_v45, %v115_v44  ;;  %v117_v56 = vld [vmem:[%s1152_s1 + $0x2f0] sm:$0xff] }
  0x2a   :  { %659 = vmatprep.subr.bf16.mxu0 %v658_v0  ;;  %v99_v51 = vld [vmem:[%s1152_s1 + $0x260] sm:$0xff]  ;;  %v100_v52 = vld [vmem:[%s1152_s1 + $0x268] sm:$0xff]  ;;  %v706_v54 = vpack.c.bf16 %v148_v47, %v147_v46  ;;  %v118_v57 = vld [vmem:[%s1152_s1 + $0x2f8] sm:$0xff] }
  0x2b   :  { %689 = vmatpush3.bf16.msra.mxu1 %v688_v63  ;;  %v131_v53 = vld [vmem:[%s1152_s1 + $0x360] sm:$0xff]  ;;  %v132_v55 = vld [vmem:[%s1152_s1 + $0x368] sm:$0xff]  ;;  %v149_v58 = vld [vmem:[%s1152_s1 + $0x3f0] sm:$0xff]  ;;  %v676_v60 = vpack.c.bf16 %v100_v52, %v99_v51  ;;  %v678_v62 = vpack.c.bf16 %v118_v57, %v117_v56 }
  0x2c   :  { %691 = vmatprep.subr.bf16.mxu1 %v690_v4  ;;  %v150_v59 = vld [vmem:[%s1152_s1 + $0x3f8] sm:$0xff]  ;;  %v708_v61 = vpack.c.bf16 %v132_v55, %v131_v53  ;;  %v101_v63 = vld [vmem:[%s1152_s1 + $0x270] sm:$0xff]  ;;  %v19_v6 = vld [vmem:[%s1153_s0 + $0x20] sm:$0xff] }
  0x2d   :  { %661 = vmatpush3.bf16.msra.mxu0 %v660_v10  ;;  %v102_v0 = vld [vmem:[%s1152_s1 + $0x278] sm:$0xff]  ;;  %v710_v1 = vpack.c.bf16 %v150_v59, %v149_v58  ;;  %v133_v2 = vld [vmem:[%s1152_s1 + $0x370] sm:$0xff] }
  0x2e   :  { %663 = vmatprep.subr.bf16.mxu0 %v662_v12  ;;  %v134_v3 = vld [vmem:[%s1152_s1 + $0x378] sm:$0xff]  ;;  %v680_v4 = vpack.c.bf16 %v102_v0, %v101_v63  ;;  %v21_v7 = vld [vmem:[%s1153_s0 + $0x30] sm:$0xff] }
  0x2f   :  { %693 = vmatpush3.bf16.msra.mxu1 %v692_v11  ;;  %v712_v5 = vpack.c.bf16 %v134_v3, %v133_v2 }
  0x30   :  { %695 = vmatprep.subr.bf16.mxu1 %v694_v16 }
  0x31   :  { %665 = vmatpush3.bf16.msra.mxu0 %v664_v22 }
  0x32   :  { %667 = vmatprep.subr.bf16.mxu0 %v666_v26 }
  0x33   :  { %697 = vmatpush3.bf16.msra.mxu1 %v696_v25 }
  0x34   :  { %699 = vmatprep.subr.bf16.mxu1 %v698_v30 }
  0x35   :  { %669 = vmatpush3.bf16.msra.mxu0 %v668_v36 }
  0x36   :  { %671 = vmatprep.subr.bf16.mxu0 %v670_v38 }
  0x37   :  { %701 = vmatpush3.bf16.msra.mxu1 %v700_v37 }
  0x38   :  { %703 = vmatprep.subr.bf16.mxu1 %v702_v42 }
  0x39   :  { %673 = vmatpush3.bf16.msra.mxu0 %v672_v48 }
  0x3a   :  { %675 = vmatprep.subr.bf16.mxu0 %v674_v50 }
  0x3b   :  { %705 = vmatpush3.bf16.msra.mxu1 %v704_v49 }
  0x3c   :  { %707 = vmatprep.subr.bf16.mxu1 %v706_v54 }
  0x3d   :  { %677 = vmatpush3.bf16.msra.mxu0 %v676_v60 }
  0x3e   :  { %679 = vmatprep.subr.bf16.mxu0 %v678_v62 }
  0x3f   :  { %709 = vmatpush3.bf16.msra.mxu1 %v708_v61 }
  0x40   :  { %711 = vmatprep.subr.bf16.mxu1 %v710_v1 }
  0x41   :  { %681 = vmatpush3.bf16.msra.mxu0 %v680_v4 }
  0x43   :  { %713 = vmatpush3.bf16.msra.mxu1 %v712_v5 }
  0x44   :  { %358 = vmatmul.mubr.f32.vlgmr.msra.gmra.mrb[2].mxu0 %v19_v6 }
  0x46   :  { %428 = vmatmul.mubr.f32.vlgmr.msra.gmra.mrb[2].mxu1 %v21_v7 }
  0xf7   :  { %v478_v8 = vpop.f32.mrb[0].mxu0 }
  0xf8   :  { %v479_v10 = vpop.f32.mrb[1].mxu0 }
  0xf9   :  { %v513_v11 = vpop.f32.mrb[0].mxu1  ;;  %v480_v12 = vadd.f32 %v479_v10, %v478_v8 }
  0xfa   :  { %v514_v13 = vpop.f32.mrb[1].mxu1 }
  0xfb   :  { %v515_v14 = vadd.f32 %v514_v13, %v513_v11  ;;  %v220_v15 = vadd.f32 %v480_v12, %v152_v9 }
  0xfd   :  { %v290_v16 = vadd.f32 %v515_v14, %v220_v15 }
 0x117   :  { %v548_v17 = vpop.f32.mrb[2].mxu0 }
 0x118   :  { %v549_v18 = vpop.f32.mrb[3].mxu0 }
 0x119   :  { %v583_v19 = vpop.f32.mrb[2].mxu1  ;;  %v550_v20 = vadd.f32 %v549_v18, %v548_v17 }
 0x11a   :  { %v584_v21 = vpop.f32.mrb[3].mxu1 }
 0x11b   :  { %v585_v22 = vadd.f32 %v584_v21, %v583_v19  ;;  %v360_v23 = vadd.f32 %v550_v20, %v290_v16 }
 0x11d   :  { %v430_v24 = vadd.f32 %v585_v22, %v360_v23 }
 0x11f   :  { %v445_v25 = vmul.f32 -1.442695, %v430_v24 }
 0x121   :  { %714 = vpow2.f32 %v445_v25 }
 0x12b   :  { %v715_v26 = vpop.eup %714 }
 0x12c   :  { %v436_v27 = vadd.f32 1.0, %v715_v26 }
 0x12e   :  { %716 = vrcp.f32 %v436_v27 }
 0x138   :  { %v717_v28 = vpop.eup %716 }
 0x139   :  { %440 = vst.msk [vmem:[%s1155_s3] sm:$0xff] %vm439_vm0, %v717_v28 }

</bundles_post_ra>
